<compile_context>
chip_gen: v6e
topology: v6e:2x2x1
jax: 0.10.0
libtpu: 0.0.40
codegen_flags: <defaults>
</compile_context>

<pallas_src>
import jax
import jax.numpy as jnp
from jax import lax
from jax.experimental import pallas as pl
from jax.experimental.pallas import tpu as pltpu


_LANES = 128
_ACC_ROWS = 8                       # accumulator = one f32 vreg (8 x 128) = 4 KiB
_CHUNK = _ACC_ROWS * _LANES         # kernel prefix granularity (1024 elements)
_MAX_TILE_ROWS = 8192               # 4 MiB per f32 input block


def _vmem_plan():
    """Generation-aware (block footprint budget, vmem_limit cap, is_v7x)."""
    try:
        kind = jax.devices()[0].device_kind.lower()
    except Exception:
        kind = ""
    if "v7" in kind or "7x" in kind:
        # v7x: 64 MiB physical / 32 MiB default scoped VMEM per TensorCore.
        return 16 * 1024 * 1024, 48 * 1024 * 1024, True
    if "v5e" in kind or "v5 lite" in kind or "v5lite" in kind:
        # v5e: most HBM-bound, gains least from huge tiles — keep blocks modest.
        return 14 * 1024 * 1024, 64 * 1024 * 1024, False
    # v6e / other 128-MiB-VMEM parts.
    return 24 * 1024 * 1024, 64 * 1024 * 1024, False


def _split_lane_dense(x):
    """Flatten `x` (metadata-only for contiguous input); return (head, tail).
    head: largest 1024-element-aligned prefix viewed as lane-dense (rows, 128),
    rows % 8 == 0 (None if the tensor has <1024 elements).
    tail: remaining <1024 elements (reduced in the wrapper at constant cost)."""
    flat = jnp.ravel(x)
    total = flat.size
    main = (total // _CHUNK) * _CHUNK
    if main == 0:
        return None, flat
    if main == total:
        return flat.reshape(total // _LANES, _LANES), flat[:0]
    return flat[:main].reshape(main // _LANES, _LANES), flat[main:]


def _pick_tile_rows(rows, bytes_per_row, footprint_budget):
    """Biggest row tile (multiple of 32, or full extent) whose double-buffered input
    blocks fit the footprint budget.  `bytes_per_row` uses the true input itemsizes."""
    budget_rows = (footprint_budget // 2) // max(1, bytes_per_row)   # /2: double buffer
    tr = min(_MAX_TILE_ROWS, max(_ACC_ROWS, budget_rows))
    if tr >= rows:
        return rows                                  # single full-extent block
    if tr >= 32:
        return (tr // 32) * 32                       # sublane-pack friendly for all dtypes
    return max(_ACC_ROWS, (tr // _ACC_ROWS) * _ACC_ROWS)


def _make_kernel(num_inputs, *, tile_rows, valid_rows, inner_steps,
                 first_masked_block, need_mask):
    def fold(v):
        # Sublane-group fold (tile_rows, 128) -> (8, 128): pure VPU vreg adds, no XLU.
        return v.reshape(-1, _ACC_ROWS, _LANES).sum(axis=0)

    def kernel(*refs):
        in_refs = refs[:num_inputs]
        out_ref = refs[num_inputs]
        acc_ref = refs[num_inputs + 1]
        c = pl.program_id(0)        # chunk / TensorCore axis
        t = pl.program_id(1)        # sequential reduction axis

        @pl.when(t == 0)
        def _():
            acc_ref[...] = jnp.zeros_like(acc_ref)

        if num_inputs == 2:
            # Fused critic loss: sum(fake) - sum(real) == sum(fake - real); both tensors
            # are read from HBM exactly once with a single accumulator.
            contrib = (in_refs[0][...].astype(jnp.float32)
                       - in_refs[1][...].astype(jnp.float32))
        else:
            contrib = in_refs[0][...].astype(jnp.float32)

        if need_mask:
            blk = c * inner_steps + t
            is_edge = blk >= first_masked_block

            @pl.when(jnp.logical_not(is_edge))
            def _():
                acc_ref[...] += fold(contrib)

            @pl.when(is_edge)
            def _():
                # Only edge (ragged / fully-OOB) blocks pay for iota + select; OOB rows
                # are zeroed with a select so garbage/NaN can never propagate.
                row = blk * tile_rows + lax.broadcasted_iota(jnp.int32, contrib.shape, 0)
                acc_ref[...] += fold(jnp.where(row < valid_rows, contrib, 0.0))
        else:
            acc_ref[...] += fold(contrib)

        @pl.when(t == inner_steps - 1)
        def _():
            out_ref[0, 0] = jnp.sum(acc_ref[...])    # one cross-lane reduce per chunk

    return kernel


def _stream_sum(arrays):
    """Stream equal-shape lane-dense (rows, 128) arrays through the reduction kernel.
    Returns the f32 scalar sum of arrays[0] (1 input) or sum(arrays[0] - arrays[1])."""
    rows, lanes = arrays[0].shape
    sum_itemsize = sum(a.dtype.itemsize for a in arrays)
    budget, vmem_cap, is_v7x = _vmem_plan()

    tile_rows = _pick_tile_rows(rows, lanes * sum_itemsize, budget)
    nblocks = pl.cdiv(rows, tile_rows)
    ncores = 2 if (is_v7x and nblocks >= 2) else 1          # real 2-TC split only on v7x
    inner = pl.cdiv(nblocks, ncores)
    ragged = (rows % tile_rows) != 0
    need_mask = ragged or (ncores * inner > nblocks)
    first_masked = (nblocks - 1) if ragged else nblocks

    kernel = _make_kernel(len(arrays), tile_rows=tile_rows, valid_rows=rows,
                          inner_steps=inner, first_masked_block=first_masked,
                          need_mask=need_mask)

    footprint = 2 * tile_rows * lanes * sum_itemsize + _ACC_ROWS * lanes * 4
    vmem_limit = int(min(vmem_cap, max(32 * 1024 * 1024, footprint + 8 * 1024 * 1024)))

    in_spec = pl.BlockSpec((tile_rows, lanes), lambda c, t: (c * inner + t, 0))
    dim_sems = ((pltpu.CORE_PARALLEL, pltpu.ARBITRARY) if ncores == 2
                else (pltpu.ARBITRARY, pltpu.ARBITRARY))

    partials = pl.pallas_call(
        kernel,
        out_shape=jax.ShapeDtypeStruct((ncores, 1), jnp.float32),
        grid_spec=pltpu.PrefetchScalarGridSpec(
            num_scalar_prefetch=0,
            grid=(ncores, inner),
            in_specs=[in_spec] * len(arrays),
            out_specs=pl.BlockSpec((1, 1), lambda c, t: (c, 0),
                                   memory_space=pltpu.SMEM),
            scratch_shapes=[pltpu.VMEM((_ACC_ROWS, lanes), jnp.float32)],
        ),
        compiler_params=pltpu.CompilerParams(
            dimension_semantics=dim_sems,
            vmem_limit_bytes=vmem_limit),
    )(*arrays)
    return jnp.sum(partials)


def _streamed_mean_diff(fake, real):
    """mean(fake) - mean(real) for equal shapes via ONE fused streaming pass."""
    fh, ft = _split_lane_dense(fake)
    rh, rt = _split_lane_dense(real)
    if fh is None:
        # Degenerate (<1024-element) tensors: constant-size wrapper reduction.
        return jnp.mean(fake.astype(jnp.float32)) - jnp.mean(real.astype(jnp.float32))
    s = _stream_sum([fh, rh])
    if ft.size:
        s = s + (jnp.sum(ft, dtype=jnp.float32) - jnp.sum(rt, dtype=jnp.float32))
    return s / jnp.float32(fake.size)


def _streamed_mean(x):
    h, t = _split_lane_dense(x)
    if h is None:
        return jnp.mean(x.astype(jnp.float32))
    s = _stream_sum([h])
    if t.size:
        s = s + jnp.sum(t, dtype=jnp.float32)
    return s / jnp.float32(x.size)


def wgan_discriminator_loss(disc_fake, disc_real):
    """Pallas implementation of WGANDiscriminatorLoss.forward: mean(fake) - mean(real)."""
    if disc_fake.shape == disc_real.shape:
        return _streamed_mean_diff(disc_fake, disc_real)
    # Differing shapes (allowed by the PyTorch module): one streamed sum per tensor.
    return _streamed_mean(disc_fake) - _streamed_mean(disc_real)


if __name__ == "__main__":
    key = jax.random.PRNGKey(0)
    keys = jax.random.split(key, 10)
    loss_fn = jax.jit(wgan_discriminator_loss)

    # 1) Primary small example: critic scores over (batch=2, seq=8, hidden=128).
    disc_fake = jax.random.normal(keys[0], (2, 8, 128), dtype=jnp.float32)
    disc_real = jax.random.normal(keys[1], (2, 8, 128), dtype=jnp.float32)
    out1 = jax.block_until_ready(loss_fn(disc_fake, disc_real))
    ref1 = jnp.mean(disc_fake) - jnp.mean(disc_real)
    assert jnp.allclose(out1, ref1, atol=1e-5, rtol=1e-5), (out1, ref1)

    # 2) Multi-block + ragged last tile (rows not a multiple of tile_rows -> edge mask).
    f2 = jax.random.normal(keys[2], (48, 272, 128), dtype=jnp.float32)
    r2 = jax.random.normal(keys[3], (48, 272, 128), dtype=jnp.float32)
    out2 = jax.block_until_ready(loss_fn(f2, r2))
    ref2 = jnp.mean(f2) - jnp.mean(r2)
    assert jnp.allclose(out2, ref2, atol=1e-4, rtol=1e-4), (out2, ref2)

    # 3) Non-128-divisible size -> lane-dense prefix in kernel + tiny wrapper tail.
    f3 = jax.random.normal(keys[4], (12, 16, 9), dtype=jnp.float32)
    r3 = jax.random.normal(keys[5], (12, 16, 9), dtype=jnp.float32)
    out3 = jax.block_until_ready(loss_fn(f3, r3))
    ref3 = jnp.mean(f3) - jnp.mean(r3)
    assert jnp.allclose(out3, ref3, atol=1e-5, rtol=1e-5), (out3, ref3)

    # 4) Differing shapes -> one streamed sum per tensor.
    f4 = jax.random.normal(keys[6], (4, 130, 3), dtype=jnp.float32)
    r4 = jax.random.normal(keys[7], (40, 33), dtype=jnp.float32)
    out4 = jax.block_until_ready(loss_fn(f4, r4))
    ref4 = jnp.mean(f4) - jnp.mean(r4)
    assert jnp.allclose(out4, ref4, atol=1e-5, rtol=1e-5), (out4, ref4)

    # 5) bf16 inputs -> itemsize-aware tiling; accumulation stays in f32.
    f5 = jax.random.normal(keys[8], (16, 8, 128), dtype=jnp.bfloat16)
    r5 = jax.random.normal(keys[9], (16, 8, 128), dtype=jnp.bfloat16)
    out5 = jax.block_until_ready(loss_fn(f5, r5))
    ref5 = jnp.mean(f5.astype(jnp.float32)) - jnp.mean(r5.astype(jnp.float32))
    assert jnp.allclose(out5, ref5, atol=1e-4, rtol=1e-4), (out5, ref5)

    print("KERNEL_OK")
</pallas_src>

<mosaic_0001>
module attributes {stable_mosaic.version = 11 : i64} {
  func.func @kernel(%arg0: i32, %arg1: i32, %arg2: memref<16x128xf32, #tpu.memory_space<vmem>>, %arg3: memref<16x128xf32, #tpu.memory_space<vmem>>, %arg4: memref<1x1xf32, #tpu.memory_space<smem>>, %arg5: memref<8x128xf32, #tpu.memory_space<vmem>>) attributes {dimension_semantics = [#tpu.dimension_semantics<arbitrary>, #tpu.dimension_semantics<arbitrary>], iteration_bounds = array<i64: 1, 1>, scalar_prefetch = 0 : i64, scratch_operands = 1 : i64, tpu.core_type = #tpu.core_type<tc>, window_params = [{transform_indices = @transform_0, window_bounds = array<i64: 16, 128>}, {transform_indices = @transform_1, window_bounds = array<i64: 16, 128>}, {transform_indices = @transform_2, window_bounds = array<i64: 1, 1>}]} {
    %c0_i32 = arith.constant 0 : i32
    %0 = arith.cmpi eq, %arg1, %c0_i32 : i32
    %1 = arith.extui %0 : i1 to i32
    %c0_i32_0 = arith.constant 0 : i32
    %2 = arith.cmpi ne, %1, %c0_i32_0 : i32
    scf.if %2 {
      %cst_10 = arith.constant 0.000000e+00 : f32
      %14 = vector.broadcast %cst_10 : f32 to vector<8x128xf32>
      %c0_11 = arith.constant 0 : index
      %c0_12 = arith.constant 0 : index
      %15 = vector.load %arg5[%c0_11, %c0_12] : memref<8x128xf32, #tpu.memory_space<vmem>>, vector<8x128xf32>
      tpu.vector_store %arg5[%c0_11, %c0_12], %14 {strides = array<i32>} : memref<8x128xf32, #tpu.memory_space<vmem>>, vector<8x128xf32>,
    } else {
    }
    %c0 = arith.constant 0 : index
    %c0_1 = arith.constant 0 : index
    %3 = vector.load %arg2[%c0, %c0_1] : memref<16x128xf32, #tpu.memory_space<vmem>>, vector<16x128xf32>
    %c0_2 = arith.constant 0 : index
    %c0_3 = arith.constant 0 : index
    %4 = vector.load %arg3[%c0_2, %c0_3] : memref<16x128xf32, #tpu.memory_space<vmem>>, vector<16x128xf32>
    %5 = arith.subf %3, %4 : vector<16x128xf32>
    %c0_4 = arith.constant 0 : index
    %c0_5 = arith.constant 0 : index
    %6 = vector.load %arg5[%c0_4, %c0_5] : memref<8x128xf32, #tpu.memory_space<vmem>>, vector<8x128xf32>
    %7 = vector.shape_cast %5 : vector<16x128xf32> to vector<2x8x128xf32>
    %cst = arith.constant dense<0.000000e+00> : vector<8x128xf32>
    %8 = vector.multi_reduction <add>, %7, %cst [0] : vector<2x8x128xf32> to vector<8x128xf32>
    %9 = arith.addf %6, %8 : vector<8x128xf32>
    %c0_6 = arith.constant 0 : index
    %c0_7 = arith.constant 0 : index
    %10 = vector.load %arg5[%c0_6, %c0_7] : memref<8x128xf32, #tpu.memory_space<vmem>>, vector<8x128xf32>
    tpu.vector_store %arg5[%c0_6, %c0_7], %9 {strides = array<i32>} : memref<8x128xf32, #tpu.memory_space<vmem>>, vector<8x128xf32>,
    %c0_i32_8 = arith.constant 0 : i32
    %11 = arith.cmpi eq, %arg1, %c0_i32_8 : i32
    %12 = arith.extui %11 : i1 to i32
    %c0_i32_9 = arith.constant 0 : i32
    %13 = arith.cmpi ne, %12, %c0_i32_9 : i32
    scf.if %13 {
      %c0_10 = arith.constant 0 : index
      %c0_11 = arith.constant 0 : index
      %14 = vector.load %arg5[%c0_10, %c0_11] : memref<8x128xf32, #tpu.memory_space<vmem>>, vector<8x128xf32>
      %15 = vector.shape_cast %14 : vector<8x128xf32> to vector<1x8x128xf32>
      %cst_12 = arith.constant dense<0.000000e+00> : vector<1xf32>
      %16 = vector.multi_reduction <add>, %15, %cst_12 [1, 2] : vector<1x8x128xf32> to vector<1xf32>
      %17 = vector.shape_cast %16 : vector<1xf32> to vector<1x1x1xf32>
      %18 = vector.extract %17[0, 0, 0] : f32 from vector<1x1x1xf32>
      %c0_13 = arith.constant 0 : index
      %c0_14 = arith.constant 0 : index
      %19 = memref.load %arg4[%c0_13, %c0_14] : memref<1x1xf32, #tpu.memory_space<smem>>
      memref.store %18, %arg4[%c0_13, %c0_14] : memref<1x1xf32, #tpu.memory_space<smem>>
    } else {
    }
    return
  }
  func.func @transform_0(%arg0: i32, %arg1: i32) -> (i32, i32) {
    %c1_i32 = arith.constant 1 : i32
    %0 = arith.muli %arg0, %c1_i32 : i32
    %1 = arith.addi %0, %arg1 : i32
    %c0_i32 = arith.constant 0 : i32
    %c0_i32_0 = arith.constant 0 : i32
    return %1, %c0_i32 : i32, i32
  }
  func.func @transform_1(%arg0: i32, %arg1: i32) -> (i32, i32) {
    %c1_i32 = arith.constant 1 : i32
    %0 = arith.muli %arg0, %c1_i32 : i32
    %1 = arith.addi %0, %arg1 : i32
    %c0_i32 = arith.constant 0 : i32
    %c0_i32_0 = arith.constant 0 : i32
    return %1, %c0_i32 : i32, i32
  }
  func.func @transform_2(%arg0: i32, %arg1: i32) -> (i32, i32) {
    %c0_i32 = arith.constant 0 : i32
    %c0_i32_0 = arith.constant 0 : i32
    return %arg0, %c0_i32 : i32, i32
  }
}

</mosaic_0001>

<bundles_post_ra>
// kernel: wgan_discriminator_loss.1
= control target key start
LH: loop header
LB: loop body
LE: loop exit
PB: predicated region body
PF: predicated region fallthrough
CT: control target
= control target key end

     0   :  { %7 = vsyncpa [#allocation4], 0  ;;  %s187_s0 = inlined_call_operand.hbm [shape: f32[16,128], index: 0, kind: input, shape index: {}]   ;;  %s188_s1 = inlined_call_operand.hbm [shape: f32[16,128], index: 1, kind: input, shape index: {}]   ;;  %s189_s2 = inlined_call_operand.hbm [shape: f32[1,1], index: 2, kind: output, shape index: {}]  }
   0x1   :  { %8 = vsyncpa [#allocation7], 0 }
   0x2   :  { %9 = vsyncpa [#allocation5], 0  ;;  %s158_s9 = smov [#allocation3]  }
   0x3   :  { %s19_s10 = sshll.u32 %s158_s9, 4  ;;  %s20_s10 = int_to_ptr.vmem [resolvable:$true] %s19_s10 }
   0x4   :  { %s112_s11 = scalar_lea.vmem %s20_s10, 256  ;;  %p117_p1 = scmp.lt.s32.totalorder %s20_s10, %s20_s10 }
   0x5   :  { %p113_p0 = scmp.ne.s32.totalorder %s20_s10, %s112_s11  ;;  %p118_p2 = scmp.lt.s32.totalorder %s112_s11, %s112_s11 }
   0x7   :  { %p119_p3 = por %p118_p2, %p117_p1 }
   0x9   :  { %p120_p4 = pnand %p119_p3, %p113_p0 }
   0xb   :  { %123 = shalt.err (!%p120_p4)
}
   0xc   :  { %s159_s12 = smov 128   ;;  %s160_s13 = smov 8  }
   0xd   :  { %25 = dma.hbm_to_vmem [thread:$0]  %s187_s0, 256, %s20_s10, [#allocation4], %s159_s12, %s159_s12, %s160_s13  }
   0xe   :  { %s161_s16 = smov [#allocation6]  }
   0xf   :  { %s35_s17 = sshll.u32 %s161_s16, 4  ;;  %s36_s17 = int_to_ptr.vmem [resolvable:$true] %s35_s17 }
  0x10   :  { %s132_s18 = scalar_lea.vmem %s36_s17, 256  ;;  %p137_p6 = scmp.lt.s32.totalorder %s36_s17, %s36_s17 }
  0x11   :  { %p133_p5 = scmp.ne.s32.totalorder %s36_s17, %s132_s18  ;;  %p138_p7 = scmp.lt.s32.totalorder %s132_s18, %s132_s18 }
  0x13   :  { %p139_p8 = por %p138_p7, %p137_p6 }
  0x15   :  { %p140_p9 = pnand %p139_p8, %p133_p5 }
  0x17   :  { %143 = shalt.err (!%p140_p9)
}
  0x18   :  { %41 = dma.hbm_to_vmem [thread:$0]  %s188_s1, 256, %s36_s17, [#allocation7], %s159_s12, %s159_s12, %s160_s13  }
  0x19   :  { %152 = dma.done.wait [#allocation4], 256  }
  0x1a   :  { %153 = vsyncadd [#allocation4], 4294967040 }
  0x1b   :  { %154 = dma.done.wait [#allocation7], 256  }
  0x1c   :  { %155 = vsyncadd [#allocation7], 4294967040  ;;  %v57_v0 = vld [vmem:[#allocation3] sm:$0xff]  ;;  %v58_v1 = vld [vmem:[#allocation3 + $0x8] sm:$0xff]  ;;  %s162_s1 = smov [#allocation8]  }
  0x1d   :  { %v59_v2 = vld [vmem:[#allocation6] sm:$0xff]  ;;  %v60_v3 = vld [vmem:[#allocation6 + $0x8] sm:$0xff] }
  0x1e   :  { %v61_v4 = vsub.f32 %v57_v0, %v59_v2  ;;  %v62_v5 = vsub.f32 %v58_v1, %v60_v3 }
  0x20   :  { %v64_v6 = vadd.f32 %v62_v5, %v61_v4 }
  0x22   :  { %71 = vadd.xlane.f32.xlu0 %v64_v6 }
  0xab   :  { %v72_v7 = vpop.xlane.xlu0 %71 }
  0xac   :  { %v73_v8 = vrot.slane %v72_v7, 4 }
  0xae   :  { %v74_v9 = vadd.f32 %v73_v8, %v72_v7 }
  0xb0   :  { %v75_v10 = vrot.slane %v74_v9, 2 }
  0xb2   :  { %v76_v11 = vadd.f32 %v75_v10, %v74_v9 }
  0xb4   :  { %v77_v12 = vrot.slane %v76_v11, 1 }
  0xb6   :  { %v78_v13 = vadd.f32 %v77_v12, %v76_v11 }
  0xb8   :  { %97 = vpush %v78_v13 }
  0xe9   :  { %s98_s0 = spop %97 }
  0xea   :  { %81 = sst [smem:[#allocation8]] %s98_s0 }
  0xeb   :  { %89 = dma.smem_to_hbm %s162_s1, 16, %s189_s2, [#allocation5]  }
  0xec   :  { %156 = dma.done.wait [#allocation5], 16  }
  0xed   :  { %157 = vsyncadd [#allocation5], 4294967280 }
  0xee   :  { %93 = sfence }
  0xef   :  { %94 = vsyncpa [#allocation4], 1 }
  0xf0   :  { %95 = vsyncpa [#allocation7], 1 }
  0xf1   :  { %96 = vsyncpa [#allocation5], 1 }

</bundles_post_ra>
